<compile_context>
chip_gen: v7x
topology: tpu7x:2x2x1
jax: 0.10.0
libtpu: 0.0.40
codegen_flags: <defaults>
</compile_context>

<pallas_src>
import jax
import jax.numpy as jnp
from jax.experimental import pallas as pl
from jax.experimental.pallas import tpu as pltpu

DIM_LATENT = 8
DIM_IN = 196        # 14 * 14
DIM_IN_PAD = 256    # 196 padded up to a lane multiple
DIM_HIDDEN = 128


def _round_up(x, m):
    return (x + m - 1) // m * m


def _cdiv(a, b):
    return (a + b - 1) // b


# --------------------------------------------------------------------------- #
# Kernel
# --------------------------------------------------------------------------- #
def _vae_kernel(x_ref, eps_ref,
                w1_ref, b1_ref,
                wh_ref, bh_ref,
                w3_ref, b3_ref,
                w4_ref, b4_ref,
                recon_ref, mu_std_ref):
    """One batch-tile of the VAE forward. All feature dims are lane-dense (128/256)."""
    f32 = jnp.float32

    # ---- encoder: h = tanh(x @ W1 + b1) ------------------------------- (bb, 128)
    h = jnp.tanh(
        jnp.dot(x_ref[...], w1_ref[...], preferred_element_type=f32) + b1_ref[...])

    # ---- fused heads (f32 matmul): [:, :8]=mu, [:, 8:16]=std, rest zero  (bb, 128)
    mu_std = (jnp.dot(h, wh_ref[...], preferred_element_type=f32) + bh_ref[...])
    mu_std_ref[...] = mu_std.astype(mu_std_ref.dtype)

    # ---- reparameterization folded into decoder input -----------------
    #   eps_ext = [1 x8 | 0.5*(eps1+eps2) x8 | 0 x112]
    #   w3_ext  = [w3 ; w3 ; 0]                       (128, 128)
    #   (mu_std * eps_ext) @ w3_ext == (mu + 0.5*(eps1+eps2)*std) @ w3 == z @ w3
    zext = mu_std * eps_ref[...].astype(f32)                        # (bb, 128)

    # ---- decoder -------------------------------------------------------
    h2 = jnp.tanh(
        jnp.dot(zext.astype(w3_ref.dtype), w3_ref[...],
                preferred_element_type=f32) + b3_ref[...])          # (bb, 128)
    logits = (jnp.dot(h2.astype(w4_ref.dtype), w4_ref[...],
                      preferred_element_type=f32) + b4_ref[...])    # (bb, 256)
    recon_ref[...] = jax.nn.sigmoid(logits).astype(recon_ref.dtype)


# --------------------------------------------------------------------------- #
# One-time parameter packing (hoisted out of the per-call forward)
# --------------------------------------------------------------------------- #
def prepare_params(params, use_bf16=True):
    """Pack / pad / cast weights once.  Call once, reuse the result every step.

    Large matmul operands (w1, w3_ext, w4) are cast to bf16 by default; the tiny
    fused fc21/fc22 head and every bias stay in f32 so mu/std keep f32 accuracy.
    """
    f32 = jnp.float32
    mm_dtype = jnp.bfloat16 if use_bf16 else f32

    w1p = jnp.zeros((DIM_IN_PAD, DIM_HIDDEN), f32).at[:DIM_IN].set(params["w1"])
    b1 = params["b1"].reshape(1, DIM_HIDDEN).astype(f32)

    whp = jnp.zeros((DIM_HIDDEN, DIM_HIDDEN), f32)
    whp = whp.at[:, :DIM_LATENT].set(params["w21"])
    whp = whp.at[:, DIM_LATENT:2 * DIM_LATENT].set(params["w22"])
    bhp = jnp.zeros((1, DIM_HIDDEN), f32)
    bhp = bhp.at[:, :DIM_LATENT].set(params["b21"].reshape(1, -1))
    bhp = bhp.at[:, DIM_LATENT:2 * DIM_LATENT].set(params["b22"].reshape(1, -1))

    w3e = jnp.zeros((DIM_HIDDEN, DIM_HIDDEN), f32)
    w3e = w3e.at[:DIM_LATENT].set(params["w3"])
    w3e = w3e.at[DIM_LATENT:2 * DIM_LATENT].set(params["w3"])
    b3 = params["b3"].reshape(1, DIM_HIDDEN).astype(f32)

    w4p = jnp.zeros((DIM_HIDDEN, DIM_IN_PAD), f32).at[:, :DIM_IN].set(params["w4"])
    b4p = jnp.zeros((1, DIM_IN_PAD), f32).at[:, :DIM_IN].set(
        params["b4"].reshape(1, -1))

    packed = dict(
        w1p=w1p.astype(mm_dtype), b1=b1,
        whp=whp, bhp=bhp,                       # head stays f32 (mu/std accuracy)
        w3e=w3e.astype(mm_dtype), b3=b3,
        w4p=w4p.astype(mm_dtype), b4p=b4p,
    )
    return jax.device_put(packed)


# --------------------------------------------------------------------------- #
# Per-call forward
# --------------------------------------------------------------------------- #
@jax.jit
def vae_forward(x_nchw, packed, eps1, eps2):
    """x_nchw: (B, 1, 14, 14). Returns (recon (B,196), mu (B,8), std (B,8)).

    recon dtype matches the matmul dtype of the packed params (bf16 by default);
    upcast outside if the loss needs f32.
    """
    f32 = jnp.float32
    mm_dtype = packed["w1p"].dtype
    recon_dtype = mm_dtype

    B = x_nchw.shape[0]
    x2d = x_nchw.reshape(B, DIM_IN)             # same as torch .view(-1, 196)

    # ---- batch tiling: single tile up to 512 rows; otherwise >=2 near-equal
    #      tiles (<=1024 rows each) -> minimal padding + both v7x TCs busy. ----
    Bp = _round_up(max(B, 8), 8)
    if Bp <= 512:
        block_b = Bp
    else:
        num_tiles = max(2, _cdiv(Bp, 1024))
        block_b = _round_up(_cdiv(Bp, num_tiles), 8)
        Bp = block_b * num_tiles

    # ---- per-call operand prep (cheap: only x pad + small eps slab) ----
    # TODO(synk): could pass x unpadded as (Bp, 196) and let the MXU handle the
    # ragged K once the lowering is verified; padded-256 kept here for safety.
    xp = jnp.pad(x2d.astype(mm_dtype),
                 ((0, Bp - B), (0, DIM_IN_PAD - DIM_IN)))           # (Bp, 256)

    eps_avg = (0.5 * (eps1.astype(f32) + eps2.astype(f32))).astype(mm_dtype)
    eps_ext = jnp.concatenate(
        [jnp.ones((B, DIM_LATENT), mm_dtype), eps_avg], axis=1)     # (B, 16)
    eps_ext = jnp.pad(eps_ext,
                      ((0, Bp - B), (0, DIM_HIDDEN - 2 * DIM_LATENT)))  # (Bp, 128)

    operands = (xp, eps_ext,
                packed["w1p"], packed["b1"],
                packed["whp"], packed["bhp"],
                packed["w3e"], packed["b3"],
                packed["w4p"], packed["b4p"])

    # ---- specs ----
    x_spec = pl.BlockSpec((block_b, DIM_IN_PAD), lambda i: (i, 0))
    h_spec = pl.BlockSpec((block_b, DIM_HIDDEN), lambda i: (i, 0))

    def full_spec(shape):
        return pl.BlockSpec(shape, lambda i: (0, 0))

    in_specs = [
        x_spec,                                     # xp
        h_spec,                                     # eps_ext
        full_spec((DIM_IN_PAD, DIM_HIDDEN)),        # w1p
        full_spec((1, DIM_HIDDEN)),                 # b1
        full_spec((DIM_HIDDEN, DIM_HIDDEN)),        # whp (fused fc21/fc22, padded)
        full_spec((1, DIM_HIDDEN)),                 # bhp
        full_spec((DIM_HIDDEN, DIM_HIDDEN)),        # w3e ([w3; w3; 0])
        full_spec((1, DIM_HIDDEN)),                 # b3
        full_spec((DIM_HIDDEN, DIM_IN_PAD)),        # w4p
        full_spec((1, DIM_IN_PAD)),                 # b4p
    ]
    out_specs = (x_spec, h_spec)
    out_shape = (
        jax.ShapeDtypeStruct((Bp, DIM_IN_PAD), recon_dtype),   # recon (padded)
        jax.ShapeDtypeStruct((Bp, DIM_HIDDEN), f32),           # mu||std (padded slab)
    )

    # Advisory cost hint so XLA schedules around the custom call sensibly.
    flops = 2 * Bp * (DIM_IN_PAD * DIM_HIDDEN + 2 * DIM_HIDDEN * DIM_HIDDEN
                      + DIM_HIDDEN * DIM_IN_PAD)
    transcendentals = Bp * (2 * DIM_HIDDEN + DIM_IN_PAD)
    in_bytes = sum(a.size * a.dtype.itemsize for a in operands)
    out_bytes = (Bp * DIM_IN_PAD * jnp.dtype(recon_dtype).itemsize
                 + Bp * DIM_HIDDEN * 4)
    cost = pl.CostEstimate(flops=flops, transcendentals=transcendentals,
                           bytes_accessed=in_bytes + out_bytes)

    recon_pad, mu_std = pl.pallas_call(
        _vae_kernel,
        out_shape=out_shape,
        grid=(Bp // block_b,),
        in_specs=in_specs,
        out_specs=out_specs,
        compiler_params=pltpu.CompilerParams(
            dimension_semantics=("parallel",)),
        cost_estimate=cost,
    )(*operands)

    recon = recon_pad[:B, :DIM_IN]
    mu = mu_std[:B, :DIM_LATENT]
    std = mu_std[:B, DIM_LATENT:2 * DIM_LATENT]
    return recon, mu, std


# --------------------------------------------------------------------------- #
# Init + pure-JAX reference
# --------------------------------------------------------------------------- #
def init_params(key):
    """Deterministic init matching the nn.Linear shapes of the PyTorch module.

    Weights are stored transposed: (in_features, out_features)."""
    def linear(k, fan_in, fan_out):
        kw, kb = jax.random.split(k)
        bound = 1.0 / jnp.sqrt(fan_in)
        w = jax.random.uniform(kw, (fan_in, fan_out), jnp.float32, -bound, bound)
        b = jax.random.uniform(kb, (1, fan_out), jnp.float32, -bound, bound)
        return w, b

    k1, k21, k22, k3, k4 = jax.random.split(key, 5)
    w1, b1 = linear(k1, DIM_IN, DIM_HIDDEN)          # fc1:  196 -> 128
    w21, b21 = linear(k21, DIM_HIDDEN, DIM_LATENT)   # fc21: 128 -> 8
    w22, b22 = linear(k22, DIM_HIDDEN, DIM_LATENT)   # fc22: 128 -> 8
    w3, b3 = linear(k3, DIM_LATENT, DIM_HIDDEN)      # fc3:  8   -> 128
    w4, b4 = linear(k4, DIM_HIDDEN, DIM_IN)          # fc4:  128 -> 196
    return dict(w1=w1, b1=b1, w21=w21, b21=b21, w22=w22, b22=b22,
                w3=w3, b3=b3, w4=w4, b4=b4)


def reference_forward(x_nchw, params, eps1, eps2):
    """Pure-JAX reference (same math as the PyTorch module) for a sanity check."""
    x = x_nchw.reshape(x_nchw.shape[0], DIM_IN)
    h = jnp.tanh(x @ params["w1"] + params["b1"])
    mu = h @ params["w21"] + params["b21"]
    std = h @ params["w22"] + params["b22"]
    z = 0.5 * (eps1 * std + mu + (eps2 * std + mu))
    h2 = jnp.tanh(z @ params["w3"] + params["b3"])
    recon = jax.nn.sigmoid(h2 @ params["w4"] + params["b4"])
    return recon, mu, std


if __name__ == "__main__":
    key = jax.random.PRNGKey(0)
    k_param, k_x, k_e1, k_e2 = jax.random.split(key, 4)

    B = 8
    x = jax.random.normal(k_x, (B, 1, 14, 14), jnp.float32)   # NCHW, 14*14 = 196
    params = init_params(k_param)

    # torch.randn_like(std) equivalents, generated deterministically outside the kernel.
    eps1 = jax.random.normal(k_e1, (B, DIM_LATENT), jnp.float32)
    eps2 = jax.random.normal(k_e2, (B, DIM_LATENT), jnp.float32)

    r_ref, mu_ref, std_ref = reference_forward(x, params, eps1, eps2)

    # ---- f32 path (tight correctness check) ----
    packed_f32 = prepare_params(params, use_bf16=False)
    recon, mu, std = vae_forward(x, packed_f32, eps1, eps2)
    jax.block_until_ready((recon, mu, std))

    assert recon.shape == (B, DIM_IN) and mu.shape == (B, DIM_LATENT) and std.shape == (B, DIM_LATENT)
    assert jnp.allclose(mu, mu_ref, atol=1e-5)
    assert jnp.allclose(std, std_ref, atol=1e-5)
    # reparam is folded into the decoder matmul (reassociation) -> slightly looser tol
    assert jnp.allclose(recon.astype(jnp.float32), r_ref, atol=1e-4)

    # ---- bf16 path (default; loose tolerance per bf16 matmul / output precision) ----
    packed_bf16 = prepare_params(params)        # use_bf16=True default
    recon_bf, mu_bf, std_bf = vae_forward(x, packed_bf16, eps1, eps2)
    jax.block_until_ready((recon_bf, mu_bf, std_bf))

    recon_bf32 = recon_bf.astype(jnp.float32)
    assert recon_bf.dtype == jnp.bfloat16
    assert jnp.all(jnp.isfinite(recon_bf32))
    assert float(jnp.max(jnp.abs(recon_bf32 - r_ref))) < 0.1
    assert float(jnp.max(jnp.abs(mu_bf - mu_ref))) < 0.1
    assert float(jnp.max(jnp.abs(std_bf - std_ref))) < 0.1

    print("KERNEL_OK")
</pallas_src>

<mosaic_0001>
module attributes {stable_mosaic.version = 11 : i64} {
  func.func @_vae_kernel(%arg0: i32, %arg1: memref<8x256xf32, #tpu.memory_space<vmem>>, %arg2: memref<8x128xf32, #tpu.memory_space<vmem>>, %arg3: memref<256x128xf32, #tpu.memory_space<vmem>>, %arg4: memref<1x128xf32, #tpu.memory_space<vmem>>, %arg5: memref<128x128xf32, #tpu.memory_space<vmem>>, %arg6: memref<1x128xf32, #tpu.memory_space<vmem>>, %arg7: memref<128x128xf32, #tpu.memory_space<vmem>>, %arg8: memref<1x128xf32, #tpu.memory_space<vmem>>, %arg9: memref<128x256xf32, #tpu.memory_space<vmem>>, %arg10: memref<1x256xf32, #tpu.memory_space<vmem>>, %arg11: memref<8x256xf32, #tpu.memory_space<vmem>>, %arg12: memref<8x128xf32, #tpu.memory_space<vmem>>) attributes {dimension_semantics = [#tpu.dimension_semantics<parallel>], iteration_bounds = array<i64: 1>, scalar_prefetch = 0 : i64, scratch_operands = 0 : i64, tpu.core_type = #tpu.core_type<tc>, window_params = [{transform_indices = @transform_0, window_bounds = array<i64: 8, 256>}, {transform_indices = @transform_1, window_bounds = array<i64: 8, 128>}, {pipeline_mode = #tpu.pipeline_mode<synchronous>, transform_indices = @transform_2, window_bounds = array<i64: 256, 128>}, {pipeline_mode = #tpu.pipeline_mode<synchronous>, transform_indices = @transform_3, window_bounds = array<i64: 1, 128>}, {pipeline_mode = #tpu.pipeline_mode<synchronous>, transform_indices = @transform_4, window_bounds = array<i64: 128, 128>}, {pipeline_mode = #tpu.pipeline_mode<synchronous>, transform_indices = @transform_5, window_bounds = array<i64: 1, 128>}, {pipeline_mode = #tpu.pipeline_mode<synchronous>, transform_indices = @transform_6, window_bounds = array<i64: 128, 128>}, {pipeline_mode = #tpu.pipeline_mode<synchronous>, transform_indices = @transform_7, window_bounds = array<i64: 1, 128>}, {pipeline_mode = #tpu.pipeline_mode<synchronous>, transform_indices = @transform_8, window_bounds = array<i64: 128, 256>}, {pipeline_mode = #tpu.pipeline_mode<synchronous>, transform_indices = @transform_9, window_bounds = array<i64: 1, 256>}, {transform_indices = @transform_10, window_bounds = array<i64: 8, 256>}, {transform_indices = @transform_11, window_bounds = array<i64: 8, 128>}]} {
    %c0 = arith.constant 0 : index
    %c0_0 = arith.constant 0 : index
    %0 = vector.load %arg1[%c0, %c0_0] : memref<8x256xf32, #tpu.memory_space<vmem>>, vector<8x256xf32>
    %c0_1 = arith.constant 0 : index
    %c0_2 = arith.constant 0 : index
    %1 = vector.load %arg3[%c0_1, %c0_2] : memref<256x128xf32, #tpu.memory_space<vmem>>, vector<256x128xf32>
    %cst = arith.constant dense<0.000000e+00> : vector<8x128xf32>
    %2 = tpu.matmul %0, %1, %cst {dimension_numbers = #tpu.dot_dimension_numbers<[1], [0], [0], [1], [0, 0, 1, 1], [], []>} : vector<8x256xf32>, vector<256x128xf32>, vector<8x128xf32> -> vector<8x128xf32>
    %c0_3 = arith.constant 0 : index
    %c0_4 = arith.constant 0 : index
    %3 = vector.load %arg4[%c0_3, %c0_4] : memref<1x128xf32, #tpu.memory_space<vmem>>, vector<1x128xf32>
    %4 = vector.broadcast %3 : vector<1x128xf32> to vector<8x128xf32>
    %5 = arith.addf %2, %4 : vector<8x128xf32>
    %6 = math.tanh %5 : vector<8x128xf32>
    %c0_5 = arith.constant 0 : index
    %c0_6 = arith.constant 0 : index
    %7 = vector.load %arg5[%c0_5, %c0_6] : memref<128x128xf32, #tpu.memory_space<vmem>>, vector<128x128xf32>
    %cst_7 = arith.constant dense<0.000000e+00> : vector<8x128xf32>
    %8 = tpu.matmul %6, %7, %cst_7 {dimension_numbers = #tpu.dot_dimension_numbers<[1], [0], [0], [1], [0, 0, 1, 1], [], []>} : vector<8x128xf32>, vector<128x128xf32>, vector<8x128xf32> -> vector<8x128xf32>
    %c0_8 = arith.constant 0 : index
    %c0_9 = arith.constant 0 : index
    %9 = vector.load %arg6[%c0_8, %c0_9] : memref<1x128xf32, #tpu.memory_space<vmem>>, vector<1x128xf32>
    %10 = vector.broadcast %9 : vector<1x128xf32> to vector<8x128xf32>
    %11 = arith.addf %8, %10 : vector<8x128xf32>
    %c0_10 = arith.constant 0 : index
    %c0_11 = arith.constant 0 : index
    %12 = vector.load %arg12[%c0_10, %c0_11] : memref<8x128xf32, #tpu.memory_space<vmem>>, vector<8x128xf32>
    tpu.vector_store %arg12[%c0_10, %c0_11], %11 {strides = array<i32>} : memref<8x128xf32, #tpu.memory_space<vmem>>, vector<8x128xf32>,
    %c0_12 = arith.constant 0 : index
    %c0_13 = arith.constant 0 : index
    %13 = vector.load %arg2[%c0_12, %c0_13] : memref<8x128xf32, #tpu.memory_space<vmem>>, vector<8x128xf32>
    %14 = arith.mulf %11, %13 : vector<8x128xf32>
    %c0_14 = arith.constant 0 : index
    %c0_15 = arith.constant 0 : index
    %15 = vector.load %arg7[%c0_14, %c0_15] : memref<128x128xf32, #tpu.memory_space<vmem>>, vector<128x128xf32>
    %cst_16 = arith.constant dense<0.000000e+00> : vector<8x128xf32>
    %16 = tpu.matmul %14, %15, %cst_16 {dimension_numbers = #tpu.dot_dimension_numbers<[1], [0], [0], [1], [0, 0, 1, 1], [], []>} : vector<8x128xf32>, vector<128x128xf32>, vector<8x128xf32> -> vector<8x128xf32>
    %c0_17 = arith.constant 0 : index
    %c0_18 = arith.constant 0 : index
    %17 = vector.load %arg8[%c0_17, %c0_18] : memref<1x128xf32, #tpu.memory_space<vmem>>, vector<1x128xf32>
    %18 = vector.broadcast %17 : vector<1x128xf32> to vector<8x128xf32>
    %19 = arith.addf %16, %18 : vector<8x128xf32>
    %20 = math.tanh %19 : vector<8x128xf32>
    %c0_19 = arith.constant 0 : index
    %c0_20 = arith.constant 0 : index
    %21 = vector.load %arg9[%c0_19, %c0_20] : memref<128x256xf32, #tpu.memory_space<vmem>>, vector<128x256xf32>
    %cst_21 = arith.constant dense<0.000000e+00> : vector<8x256xf32>
    %22 = tpu.matmul %20, %21, %cst_21 {dimension_numbers = #tpu.dot_dimension_numbers<[1], [0], [0], [1], [0, 0, 1, 1], [], []>} : vector<8x128xf32>, vector<128x256xf32>, vector<8x256xf32> -> vector<8x256xf32>
    %c0_22 = arith.constant 0 : index
    %c0_23 = arith.constant 0 : index
    %23 = vector.load %arg10[%c0_22, %c0_23] : memref<1x256xf32, #tpu.memory_space<vmem>>, vector<1x256xf32>
    %24 = vector.broadcast %23 : vector<1x256xf32> to vector<8x256xf32>
    %25 = arith.addf %22, %24 : vector<8x256xf32>
    %26 = arith.negf %25 : vector<8x256xf32>
    %27 = math.exp %26 : vector<8x256xf32>
    %cst_24 = arith.constant 1.000000e+00 : f32
    %28 = vector.broadcast %cst_24 : f32 to vector<8x256xf32>
    %29 = arith.addf %28, %27 : vector<8x256xf32>
    %30 = arith.divf %28, %29 : vector<8x256xf32>
    %c0_25 = arith.constant 0 : index
    %c0_26 = arith.constant 0 : index
    %31 = vector.load %arg11[%c0_25, %c0_26] : memref<8x256xf32, #tpu.memory_space<vmem>>, vector<8x256xf32>
    tpu.vector_store %arg11[%c0_25, %c0_26], %30 {strides = array<i32>} : memref<8x256xf32, #tpu.memory_space<vmem>>, vector<8x256xf32>,
    return
  }
  func.func @transform_0(%arg0: i32) -> (i32, i32) {
    %c0_i32 = arith.constant 0 : i32
    %c0_i32_0 = arith.constant 0 : i32
    return %arg0, %c0_i32 : i32, i32
  }
  func.func @transform_1(%arg0: i32) -> (i32, i32) {
    %c0_i32 = arith.constant 0 : i32
    %c0_i32_0 = arith.constant 0 : i32
    return %arg0, %c0_i32 : i32, i32
  }
  func.func @transform_2(%arg0: i32) -> (i32, i32) {
    %c0_i32 = arith.constant 0 : i32
    %c0_i32_0 = arith.constant 0 : i32
    %c0_i32_1 = arith.constant 0 : i32
    return %c0_i32, %c0_i32_0 : i32, i32
  }
  func.func @transform_3(%arg0: i32) -> (i32, i32) {
    %c0_i32 = arith.constant 0 : i32
    %c0_i32_0 = arith.constant 0 : i32
    %c0_i32_1 = arith.constant 0 : i32
    return %c0_i32, %c0_i32_0 : i32, i32
  }
  func.func @transform_4(%arg0: i32) -> (i32, i32) {
    %c0_i32 = arith.constant 0 : i32
    %c0_i32_0 = arith.constant 0 : i32
    %c0_i32_1 = arith.constant 0 : i32
    return %c0_i32, %c0_i32_0 : i32, i32
  }
  func.func @transform_5(%arg0: i32) -> (i32, i32) {
    %c0_i32 = arith.constant 0 : i32
    %c0_i32_0 = arith.constant 0 : i32
    %c0_i32_1 = arith.constant 0 : i32
    return %c0_i32, %c0_i32_0 : i32, i32
  }
  func.func @transform_6(%arg0: i32) -> (i32, i32) {
    %c0_i32 = arith.constant 0 : i32
    %c0_i32_0 = arith.constant 0 : i32
    %c0_i32_1 = arith.constant 0 : i32
    return %c0_i32, %c0_i32_0 : i32, i32
  }
  func.func @transform_7(%arg0: i32) -> (i32, i32) {
    %c0_i32 = arith.constant 0 : i32
    %c0_i32_0 = arith.constant 0 : i32
    %c0_i32_1 = arith.constant 0 : i32
    return %c0_i32, %c0_i32_0 : i32, i32
  }
  func.func @transform_8(%arg0: i32) -> (i32, i32) {
    %c0_i32 = arith.constant 0 : i32
    %c0_i32_0 = arith.constant 0 : i32
    %c0_i32_1 = arith.constant 0 : i32
    return %c0_i32, %c0_i32_0 : i32, i32
  }
  func.func @transform_9(%arg0: i32) -> (i32, i32) {
    %c0_i32 = arith.constant 0 : i32
    %c0_i32_0 = arith.constant 0 : i32
    %c0_i32_1 = arith.constant 0 : i32
    return %c0_i32, %c0_i32_0 : i32, i32
  }
  func.func @transform_10(%arg0: i32) -> (i32, i32) {
    %c0_i32 = arith.constant 0 : i32
    %c0_i32_0 = arith.constant 0 : i32
    return %arg0, %c0_i32 : i32, i32
  }
  func.func @transform_11(%arg0: i32) -> (i32, i32) {
    %c0_i32 = arith.constant 0 : i32
    %c0_i32_0 = arith.constant 0 : i32
    return %arg0, %c0_i32 : i32, i32
  }
}

</mosaic_0001>

<bundles_post_ra>
// kernel: vae_forward.1
= control target key start
LH: loop header
LB: loop body
LE: loop exit
PB: predicated region body
PF: predicated region fallthrough
CT: control target
= control target key end

     0   :  { %17 = vsyncpa [#allocation3], 0  ;;  %s1157_s0 = inlined_call_operand.vmem [shape: f32[8,256], index: 0, kind: input, shape index: {}]   ;;  %s1158_s1 = inlined_call_operand.vmem [shape: f32[8,128], index: 1, kind: input, shape index: {}]   ;;  %s1159_s2 = inlined_call_operand.vmem [shape: f32[256,128], index: 2, kind: input, shape index: {}]   ;;  %s1160_s3 = inlined_call_operand.vmem [shape: f32[1,128], index: 3, kind: input, shape index: {}]   ;;  %s1161_s4 = inlined_call_operand.vmem [shape: f32[128,128], index: 4, kind: input, shape index: {}]   ;;  %s1162_s5 = inlined_call_operand.vmem [shape: f32[1,128], index: 5, kind: input, shape index: {}]   ;;  %s1163_s6 = inlined_call_operand.hbm [shape: f32[128,128], index: 6, kind: input, shape index: {}]   ;;  %s1164_s7 = inlined_call_operand.vmem [shape: f32[1,128], index: 7, kind: input, shape index: {}]   ;;  %s1165_s8 = inlined_call_operand.hbm [shape: f32[128,256], index: 8, kind: input, shape index: {}]   ;;  %s1166_s9 = inlined_call_operand.vmem [shape: f32[1,256], index: 9, kind: input, shape index: {}]   ;;  %s1167_s10 = inlined_call_operand.hbm [shape: f32[8,256], index: 10, kind: output, shape index: {0}]   ;;  %s1168_s11 = inlined_call_operand.vmem [shape: f32[8,128], index: 11, kind: output, shape index: {1}]  }
   0x1   :  { %18 = vsyncpa [#allocation6], 0 }
   0x2   :  { %19 = vsyncpa [#allocation4], 0  ;;  %s867_s17 = smov [#allocation2]   ;;  %s795_s21 = scalar_lea.hbm %s1163_s6, 2048 }
   0x3   :  { %s37_s18 = sshll.u32 %s867_s17, 4  ;;  %p796_p0 = scmp.ne.s32.totalorder %s1163_s6, %s795_s21  ;;  %s38_s18 = int_to_ptr.vmem [resolvable:$true] %s37_s18 }
   0x4   :  { %p799_p1 = scmp.lt.u32.totalorder %s795_s21, %s1163_s6 }
   0x6   :  { %p801_p2 = pnand %p799_p1, %p796_p0 }
   0x8   :  { %804 = shalt.err (!%p801_p2)
}
   0x9   :  { %s805_s26 = scalar_lea.vmem %s38_s18, 2048  ;;  %p810_p4 = scmp.lt.s32.totalorder %s38_s18, %s38_s18 }
   0xa   :  { %p806_p3 = scmp.ne.s32.totalorder %s38_s18, %s805_s26  ;;  %p811_p5 = scmp.lt.s32.totalorder %s805_s26, %s805_s26 }
   0xc   :  { %p812_p6 = por %p811_p5, %p810_p4 }
   0xe   :  { %p813_p7 = pnand %p812_p6, %p806_p3 }
  0x10   :  { %816 = shalt.err (!%p813_p7)
}
  0x11   :  { %s868_s27 = smov 128   ;;  %s869_s28 = smov 8  }
  0x12   :  { %43 = dma.hbm_to_vmem [thread:$0]  %s1163_s6, 2048, %s38_s18, [#allocation3], %s868_s27, %s868_s27, %s869_s28  }
  0x13   :  { %s870_s12 = smov [#allocation5]   ;;  %s817_s16 = scalar_lea.hbm %s1165_s8, 4096 }
  0x14   :  { %s51_s13 = sshll.u32 %s870_s12, 4  ;;  %p818_p8 = scmp.ne.s32.totalorder %s1165_s8, %s817_s16  ;;  %s52_s13 = int_to_ptr.vmem [resolvable:$true] %s51_s13 }
  0x15   :  { %p821_p9 = scmp.lt.u32.totalorder %s817_s16, %s1165_s8 }
  0x17   :  { %p823_p10 = pnand %p821_p9, %p818_p8 }
  0x19   :  { %826 = shalt.err (!%p823_p10)
}
  0x1a   :  { %s827_s22 = scalar_lea.vmem %s52_s13, 4096  ;;  %p832_p12 = scmp.lt.s32.totalorder %s52_s13, %s52_s13 }
  0x1b   :  { %p828_p11 = scmp.ne.s32.totalorder %s52_s13, %s827_s22  ;;  %p833_p13 = scmp.lt.s32.totalorder %s827_s22, %s827_s22 }
  0x1d   :  { %p834_p0 = por %p833_p13, %p832_p12 }
  0x1f   :  { %p835_p1 = pnand %p834_p0, %p828_p11 }
  0x21   :  { %838 = shalt.err (!%p835_p1)
}
  0x22   :  { %s871_s6 = smov 256   ;;  %s872_s18 = smov 16  }
  0x23   :  { %57 = dma.hbm_to_vmem [thread:$0]  %s1165_s8, 4096, %s52_s13, [#allocation6], %s871_s6, %s871_s6, %s872_s18  }
  0x24   :  { %861 = dma.done.wait [#allocation3], 2048  }
  0x25   :  { %862 = vsyncadd [#allocation3], 4294965248 }
  0x26   :  { %863 = dma.done.wait [#allocation6], 4096  }
  0x27   :  { %864 = vsyncadd [#allocation6], 4294963200  ;;  %v873_v0 = vmov 0.0|0.0   ;;  %v84_v1 = vld [vmem:[%s1159_s2 + $0x80] sm:$0xff]  ;;  %v85_v2 = vld [vmem:[%s1159_s2 + $0x88] sm:$0xff]  ;;  %vm874_vm0 = vmmov 0  }
  0x28   :  { %693 = vmatprep.subr.bf16.mxu1 %v873_v0  ;;  %v68_v3 = vld [vmem:[%s1159_s2] sm:$0xff]  ;;  %v661_v4 = vpack.c.bf16 %v85_v2, %v84_v1  ;;  %v69_v5 = vld [vmem:[%s1159_s2 + $0x8] sm:$0xff]  ;;  %v86_v6 = vld [vmem:[%s1159_s2 + $0x90] sm:$0xff] }
  0x29   :  { %v87_v7 = vld [vmem:[%s1159_s2 + $0x98] sm:$0xff]  ;;  %v663_v8 = vpack.c.bf16 %v69_v5, %v68_v3  ;;  %v70_v10 = vld [vmem:[%s1159_s2 + $0x10] sm:$0xff]  ;;  %v88_v12 = vld [vmem:[%s1159_s2 + $0xa0] sm:$0xff] }
  0x2a   :  { %v665_v9 = vpack.c.bf16 %v87_v7, %v86_v6  ;;  %v71_v11 = vld [vmem:[%s1159_s2 + $0x18] sm:$0xff]  ;;  %662 = vmatprep.subr.bf16.mxu0 %v661_v4  ;;  %v89_v13 = vld [vmem:[%s1159_s2 + $0xa8] sm:$0xff]  ;;  %v72_v16 = vld [vmem:[%s1159_s2 + $0x20] sm:$0xff] }
  0x2b   :  { %664 = vmatpush3.bf16.msra.mxu0 %v663_v8  ;;  %v667_v14 = vpack.c.bf16 %v71_v11, %v70_v10  ;;  %v669_v15 = vpack.c.bf16 %v89_v13, %v88_v12  ;;  %v73_v17 = vld [vmem:[%s1159_s2 + $0x28] sm:$0xff]  ;;  %v90_v18 = vld [vmem:[%s1159_s2 + $0xb0] sm:$0xff]  ;;  %v91_v19 = vld [vmem:[%s1159_s2 + $0xb8] sm:$0xff]  ;;  %v875_v11 = vmov 0.0  }
  0x2c   :  { %666 = vmatprep.subr.bf16.mxu0 %v665_v9  ;;  %v671_v20 = vpack.c.bf16 %v73_v17, %v72_v16  ;;  %v673_v21 = vpack.c.bf16 %v91_v19, %v90_v18  ;;  %v74_v22 = vld [vmem:[%s1159_s2 + $0x30] sm:$0xff]  ;;  %v75_v23 = vld [vmem:[%s1159_s2 + $0x38] sm:$0xff]  ;;  %v92_v24 = vld [vmem:[%s1159_s2 + $0xc0] sm:$0xff]  ;;  %623 = vmatprep.mubr.msk.f32.mxu1 %vm874_vm0, %v875_v11 }
  0x2d   :  { %v93_v25 = vld [vmem:[%s1159_s2 + $0xc8] sm:$0xff]  ;;  %v178_v27 = vld [vmem:[%s1161_s4] sm:$0xff]  ;;  %v675_v29 = vpack.c.bf16 %v75_v23, %v74_v22  ;;  %v180_v31 = vld [vmem:[%s1161_s4 + $0x10] sm:$0xff] }
  0x2e   :  { %v67_v26 = vld [vmem:[%s1157_s0 + $0x8] sm:$0xff]  ;;  %v181_v32 = vld [vmem:[%s1161_s4 + $0x18] sm:$0xff]  ;;  %v677_v33 = vpack.c.bf16 %v93_v25, %v92_v24  ;;  %v76_v34 = vld [vmem:[%s1159_s2 + $0x40] sm:$0xff] }
  0x2f   :  { %668 = vmatpush3.bf16.msra.mxu0 %v667_v14  ;;  %171 = vmatprep.mubr.f32.mxu0 %v67_v26  ;;  %v179_v28 = vld [vmem:[%s1161_s4 + $0x8] sm:$0xff]  ;;  %v94_v36 = vld [vmem:[%s1159_s2 + $0xd0] sm:$0xff]  ;;  %v95_v37 = vld [vmem:[%s1159_s2 + $0xd8] sm:$0xff]  ;;  %v697_v38 = vpack.c.bf16 %v181_v32, %v180_v31 }
  0x30   :  { %670 = vmatprep.subr.bf16.mxu0 %v669_v15  ;;  %v694_v30 = vpack.c.bf16 %v179_v28, %v178_v27  ;;  %v77_v35 = vld [vmem:[%s1159_s2 + $0x48] sm:$0xff]  ;;  %v182_v39 = vld [vmem:[%s1161_s4 + $0x20] sm:$0xff]  ;;  %v681_v42 = vpack.c.bf16 %v95_v37, %v94_v36  ;;  %v78_v43 = vld [vmem:[%s1159_s2 + $0x50] sm:$0xff] }
  0x31   :  { %v183_v40 = vld [vmem:[%s1161_s4 + $0x28] sm:$0xff]  ;;  %v679_v41 = vpack.c.bf16 %v77_v35, %v76_v34  ;;  %v79_v44 = vld [vmem:[%s1159_s2 + $0x58] sm:$0xff]  ;;  %v96_v45 = vld [vmem:[%s1159_s2 + $0xe0] sm:$0xff] }
  0x32   :  { %695 = vmatpush3.bf16.msra.mxu1 %v694_v30  ;;  %v97_v46 = vld [vmem:[%s1159_s2 + $0xe8] sm:$0xff]  ;;  %v700_v47 = vpack.c.bf16 %v183_v40, %v182_v39  ;;  %v184_v48 = vld [vmem:[%s1161_s4 + $0x30] sm:$0xff]  ;;  %v185_v49 = vld [vmem:[%s1161_s4 + $0x38] sm:$0xff]  ;;  %v683_v50 = vpack.c.bf16 %v79_v44, %v78_v43 }
  0x33   :  { %672 = vmatpush3.bf16.msra.mxu0 %v671_v20  ;;  %696 = vmatprep.subr.bf16.mxu1 %v873_v0  ;;  %v685_v51 = vpack.c.bf16 %v97_v46, %v96_v45  ;;  %v80_v52 = vld [vmem:[%s1159_s2 + $0x60] sm:$0xff]  ;;  %v81_v53 = vld [vmem:[%s1159_s2 + $0x68] sm:$0xff]  ;;  %v98_v54 = vld [vmem:[%s1159_s2 + $0xf0] sm:$0xff]  ;;  %v703_v56 = vpack.c.bf16 %v185_v49, %v184_v48 }
  0x34   :  { %674 = vmatprep.subr.bf16.mxu0 %v673_v21  ;;  %v99_v55 = vld [vmem:[%s1159_s2 + $0xf8] sm:$0xff]  ;;  %v687_v57 = vpack.c.bf16 %v81_v53, %v80_v52  ;;  %v82_v59 = vld [vmem:[%s1159_s2 + $0x70] sm:$0xff]  ;;  %v66_v62 = vld [vmem:[%s1157_s0] sm:$0xff] }
  0x35   :  { %v689_v58 = vpack.c.bf16 %v99_v55, %v98_v54  ;;  %v83_v60 = vld [vmem:[%s1159_s2 + $0x78] sm:$0xff]  ;;  %v186_v63 = vld [vmem:[%s1161_s4 + $0x40] sm:$0xff]  ;;  %v187_v1 = vld [vmem:[%s1161_s4 + $0x48] sm:$0xff] }
  0x36   :  { %698 = vmatpush3.bf16.msra.mxu1 %v697_v38  ;;  %v691_v61 = vpack.c.bf16 %v83_v60, %v82_v59  ;;  %v706_v2 = vpack.c.bf16 %v187_v1, %v186_v63  ;;  %v188_v3 = vld [vmem:[%s1161_s4 + $0x50] sm:$0xff]  ;;  %v189_v4 = vld [vmem:[%s1161_s4 + $0x58] sm:$0xff]  ;;  %v190_v6 = vld [vmem:[%s1161_s4 + $0x60] sm:$0xff] }
  0x37   :  { %676 = vmatpush3.bf16.msra.mxu0 %v675_v29  ;;  %699 = vmatprep.subr.bf16.mxu1 %v873_v0  ;;  %v709_v5 = vpack.c.bf16 %v189_v4, %v188_v3  ;;  %v191_v7 = vld [vmem:[%s1161_s4 + $0x68] sm:$0xff]  ;;  %v192_v9 = vld [vmem:[%s1161_s4 + $0x70] sm:$0xff]  ;;  %v193_v10 = vld [vmem:[%s1161_s4 + $0x78] sm:$0xff] }
  0x38   :  { %678 = vmatprep.subr.bf16.mxu0 %v677_v33  ;;  %v712_v8 = vpack.c.bf16 %v191_v7, %v190_v6  ;;  %v715_v12 = vpack.c.bf16 %v193_v10, %v192_v9  ;;  %v274_v13 = vld [vmem:[#allocation2] sm:$0xff]  ;;  %v275_v14 = vld [vmem:[#allocation2 + $0x8] sm:$0xff]  ;;  %v276_v15 = vld [vmem:[#allocation2 + $0x10] sm:$0xff] }
  0x39   :  { %v718_v16 = vpack.c.bf16 %v275_v14, %v274_v13  ;;  %v277_v17 = vld [vmem:[#allocation2 + $0x18] sm:$0xff]  ;;  %v278_v19 = vld [vmem:[#allocation2 + $0x20] sm:$0xff]  ;;  %v279_v20 = vld [vmem:[#allocation2 + $0x28] sm:$0xff] }
  0x3a   :  { %701 = vmatpush3.bf16.msra.mxu1 %v700_v47  ;;  %v721_v18 = vpack.c.bf16 %v277_v17, %v276_v15  ;;  %v724_v21 = vpack.c.bf16 %v279_v20, %v278_v19  ;;  %v280_v22 = vld [vmem:[#allocation2 + $0x30] sm:$0xff]  ;;  %v281_v23 = vld [vmem:[#allocation2 + $0x38] sm:$0xff]  ;;  %v282_v25 = vld [vmem:[#allocation2 + $0x40] sm:$0xff] }
  0x3b   :  { %680 = vmatpush3.bf16.msra.mxu0 %v679_v41  ;;  %702 = vmatprep.subr.bf16.mxu1 %v873_v0  ;;  %v727_v24 = vpack.c.bf16 %v281_v23, %v280_v22  ;;  %v283_v26 = vld [vmem:[#allocation2 + $0x48] sm:$0xff]  ;;  %v284_v28 = vld [vmem:[#allocation2 + $0x50] sm:$0xff]  ;;  %v285_v29 = vld [vmem:[#allocation2 + $0x58] sm:$0xff] }
  0x3c   :  { %682 = vmatprep.subr.bf16.mxu0 %v681_v42  ;;  %v730_v27 = vpack.c.bf16 %v283_v26, %v282_v25  ;;  %v733_v30 = vpack.c.bf16 %v285_v29, %v284_v28  ;;  %v286_v31 = vld [vmem:[#allocation2 + $0x60] sm:$0xff]  ;;  %v287_v32 = vld [vmem:[#allocation2 + $0x68] sm:$0xff]  ;;  %v288_v40 = vld [vmem:[#allocation2 + $0x70] sm:$0xff] }
  0x3d   :  { %v736_v33 = vpack.c.bf16 %v287_v32, %v286_v31  ;;  %v517_v35 = vld [vmem:[%s1160_s3] ss:$0 sm:$0xff]  ;;  %v289_v41 = vld [vmem:[#allocation2 + $0x78] sm:$0xff]  ;;  %v369_v43 = vld [vmem:[#allocation5 + $0x8] sm:$0xff] }
  0x3e   :  { %704 = vmatpush3.bf16.msra.mxu1 %v703_v56  ;;  %v739_v42 = vpack.c.bf16 %v289_v41, %v288_v40  ;;  %v371_v44 = vld [vmem:[#allocation5 + $0x18] sm:$0xff]  ;;  %v368_v45 = vld [vmem:[#allocation5] sm:$0xff]  ;;  %v370_v46 = vld [vmem:[#allocation5 + $0x10] sm:$0xff] }
  0x3f   :  { %684 = vmatpush3.bf16.msra.mxu0 %v683_v50  ;;  %705 = vmatprep.subr.bf16.mxu1 %v873_v0  ;;  %v373_v47 = vld [vmem:[#allocation5 + $0x28] sm:$0xff]  ;;  %v375_v48 = vld [vmem:[#allocation5 + $0x38] sm:$0xff]  ;;  %v743_v49 = vpack.c.bf16 %v370_v46, %v368_v45  ;;  %v374_v52 = vld [vmem:[#allocation5 + $0x30] sm:$0xff] }
  0x40   :  { %686 = vmatprep.subr.bf16.mxu0 %v685_v51  ;;  %v745_v50 = vpack.c.bf16 %v375_v48, %v373_v47  ;;  %v372_v51 = vld [vmem:[#allocation5 + $0x20] sm:$0xff]  ;;  %v377_v53 = vld [vmem:[#allocation5 + $0x48] sm:$0xff]  ;;  %v379_v54 = vld [vmem:[#allocation5 + $0x58] sm:$0xff] }
  0x41   :  { %v747_v55 = vpack.c.bf16 %v374_v52, %v372_v51  ;;  %v749_v56 = vpack.c.bf16 %v379_v54, %v377_v53  ;;  %v381_v59 = vld [vmem:[#allocation5 + $0x68] sm:$0xff]  ;;  %v383_v60 = vld [vmem:[#allocation5 + $0x78] sm:$0xff]  ;;  %v380_v63 = vld [vmem:[#allocation5 + $0x60] sm:$0xff] }
  0x42   :  { %707 = vmatpush3.bf16.msra.mxu1 %v706_v2  ;;  %v382_v1 = vld [vmem:[#allocation5 + $0x70] sm:$0xff]  ;;  %v385_v2 = vld [vmem:[#allocation5 + $0x88] sm:$0xff]  ;;  %v387_v3 = vld [vmem:[#allocation5 + $0x98] sm:$0xff] }
  0x43   :  { %688 = vmatpush3.bf16.msra.mxu0 %v687_v57  ;;  %708 = vmatprep.subr.bf16.mxu1 %v873_v0  ;;  %v376_v57 = vld [vmem:[#allocation5 + $0x40] sm:$0xff]  ;;  %v755_v4 = vpack.c.bf16 %v382_v1, %v380_v63  ;;  %v386_v7 = vld [vmem:[#allocation5 + $0x90] sm:$0xff]  ;;  %v389_v15 = vld [vmem:[#allocation5 + $0xa8] sm:$0xff] }
  0x44   :  { %690 = vmatprep.subr.bf16.mxu0 %v689_v58  ;;  %v378_v58 = vld [vmem:[#allocation5 + $0x50] sm:$0xff]  ;;  %v384_v6 = vld [vmem:[#allocation5 + $0x80] sm:$0xff]  ;;  %v395_v22 = vld [vmem:[#allocation5 + $0xd8] sm:$0xff] }
  0x45   :  { %v518_v9 = vld [vmem:[%s1162_s5] ss:$0 sm:$0xff]  ;;  %v390_v19 = vld [vmem:[#allocation5 + $0xb0] sm:$0xff]  ;;  %v397_v26 = vld [vmem:[#allocation5 + $0xe8] sm:$0xff] }
  0x46   :  { %710 = vmatpush3.bf16.msra.mxu1 %v709_v5  ;;  %v757_v5 = vpack.c.bf16 %v387_v3, %v385_v2  ;;  %v392_v23 = vld [vmem:[#allocation5 + $0xc0] sm:$0xff]  ;;  %v394_v25 = vld [vmem:[#allocation5 + $0xd0] sm:$0xff] }
  0x47   :  { %692 = vmatpush3.bf16.msra.mxu0 %v691_v61  ;;  %711 = vmatprep.subr.bf16.mxu1 %v873_v0  ;;  %v751_v61 = vpack.c.bf16 %v378_v58, %v376_v57  ;;  %v767_v28 = vpack.c.bf16 %v394_v25, %v392_v23  ;;  %v398_v31 = vld [vmem:[#allocation5 + $0xf0] sm:$0xff]  ;;  %v400_v41 = vld [vmem:[%s1166_s9] sm:$0x3] }
  0x48   :  { %717 = vmatprep.subr.bf16.mxu0 %v873_v0 }
  0x4a   :  { %172 = vmatmul.mubr.f32.vlgmr.msra.gmra.mrb[0].mxu0 %v66_v62  ;;  %713 = vmatpush3.bf16.msra.mxu1 %v712_v8  ;;  %v753_v62 = vpack.c.bf16 %v383_v60, %v381_v59  ;;  %v759_v8 = vpack.c.bf16 %v386_v7, %v384_v6 }
  0x4b   :  { %658 = vmatprep.mubr.msk.f32.mxu0 %vm874_vm0, %v875_v11  ;;  %714 = vmatprep.subr.bf16.mxu1 %v873_v0 }
  0x4c   :  { %719 = vmatpush3.bf16.msra.mxu0 %v718_v16  ;;  %v391_v16 = vld [vmem:[#allocation5 + $0xb8] sm:$0xff] }
  0x4d   :  { %720 = vmatprep.subr.bf16.mxu0 %v873_v0  ;;  %v761_v17 = vpack.c.bf16 %v391_v16, %v389_v15 }
  0x4e   :  { %716 = vmatpush3.bf16.msra.mxu1 %v715_v12 }
  0x50   :  { %722 = vmatpush3.bf16.msra.mxu0 %v721_v18  ;;  %v388_v18 = vld [vmem:[#allocation5 + $0xa0] sm:$0xff] }
  0x51   :  { %723 = vmatprep.subr.bf16.mxu0 %v873_v0  ;;  %v763_v20 = vpack.c.bf16 %v390_v19, %v388_v18 }
  0x54   :  { %725 = vmatpush3.bf16.msra.mxu0 %v724_v21  ;;  %v393_v21 = vld [vmem:[#allocation5 + $0xc8] sm:$0xff] }
  0x55   :  { %726 = vmatprep.subr.bf16.mxu0 %v873_v0 }
  0x58   :  { %728 = vmatpush3.bf16.msra.mxu0 %v727_v24  ;;  %v765_v24 = vpack.c.bf16 %v395_v22, %v393_v21 }
  0x59   :  { %729 = vmatprep.subr.bf16.mxu0 %v873_v0 }
  0x5c   :  { %731 = vmatpush3.bf16.msra.mxu0 %v730_v27  ;;  %v399_v27 = vld [vmem:[#allocation5 + $0xf8] sm:$0xff] }
  0x5d   :  { %732 = vmatprep.subr.bf16.mxu0 %v873_v0  ;;  %v769_v29 = vpack.c.bf16 %v399_v27, %v397_v26 }
  0x60   :  { %734 = vmatpush3.bf16.msra.mxu0 %v733_v30  ;;  %v396_v30 = vld [vmem:[#allocation5 + $0xe0] sm:$0xff] }
  0x61   :  { %735 = vmatprep.subr.bf16.mxu0 %v873_v0  ;;  %v771_v32 = vpack.c.bf16 %v398_v31, %v396_v30 }
  0x64   :  { %737 = vmatpush3.bf16.msra.mxu0 %v736_v33  ;;  %v519_v33 = vld [vmem:[%s1164_s7] ss:$0 sm:$0xff]  ;;  %s876_s7 = smov [#allocation7]  }
  0x65   :  { %738 = vmatprep.subr.bf16.mxu0 %v873_v0  ;;  %v741_v0 = vpack.c.bf16 %v371_v44, %v369_v43  ;;  %s503_s25 = sshll.u32 %s876_s7, 4  ;;  %s504_s25 = int_to_ptr.vmem [resolvable:$true] %s503_s25 }
  0x66   :  { %s839_s9 = scalar_lea.vmem %s504_s25, 256  ;;  %p844_p3 = scmp.lt.s32.totalorder %s504_s25, %s504_s25 }
  0x67   :  { %742 = vmatprep.subr.bf16.mxu1 %v741_v0  ;;  %p840_p2 = scmp.ne.s32.totalorder %s504_s25, %s839_s9  ;;  %p845_p4 = scmp.lt.s32.totalorder %s839_s9, %s839_s9 }
  0x68   :  { %740 = vmatpush3.bf16.msra.mxu0 %v739_v42 }
  0x69   :  { %p846_p5 = por %p845_p4, %p844_p3 }
  0x6b   :  { %p847_p6 = pnand %p846_p5, %p840_p2 }
 0x11d   :  { %v554_v34 = vpop.f32.mrb[0].mxu0 }
 0x11e   :  { %v555_v36 = vpop.f32.mrb[1].mxu0 }
 0x11f   :  { %v556_v37 = vadd.f32 %v555_v36, %v554_v34 }
 0x121   :  { %v174_v38 = vadd.f32 %v556_v37, %v517_v35 }
 0x123   :  { %783 = vtanh.f32 %v174_v38  ;;  %v402_v38 = vlaneseq }
 0x12d   :  { %v784_v39 = vpop.eup %783 }
 0x12e   :  { %624 = vmatmul.mubr.f32.vlgmr.msra.gmra.mrb[0].mxu1 %v784_v39  ;;  %v403_v39 = vshrl.u32 %v402_v38, 7 }
 0x12f   :  { %476 = vmatprep.mubr.f32.mxu1 %v875_v11  ;;  %744 = vmatpush1.bf16.msra.mxu1 %v743_v49  ;;  %v272_v11 = vld [vmem:[%s1158_s1] sm:$0xff] }
 0x130   :  { %746 = vmatprep.subr.bf16.mxu1 %v745_v50  ;;  %v404_v40 = vsub.s32 0, %v403_v39  ;;  %v408_v42 = vsub.s32 1, %v403_v39 }
 0x132   :  { %v405_v43 = vrot.slane %v400_v41, %v404_v40  ;;  %v409_v44 = vrot.slane %v400_v41, %v408_v42 }
 0x133   :  { %748 = vmatpush1.bf16.msra.mxu1 %v747_v55 }
 0x134   :  { %750 = vmatprep.subr.bf16.mxu1 %v749_v56 }
 0x137   :  { %752 = vmatpush1.bf16.msra.mxu1 %v751_v61 }
 0x138   :  { %754 = vmatprep.subr.bf16.mxu1 %v753_v62 }
 0x13b   :  { %756 = vmatpush1.bf16.msra.mxu1 %v755_v4 }
 0x13c   :  { %758 = vmatprep.subr.bf16.mxu1 %v757_v5 }
 0x13f   :  { %760 = vmatpush1.bf16.msra.mxu1 %v759_v8 }
 0x140   :  { %762 = vmatprep.subr.bf16.mxu1 %v761_v17 }
 0x143   :  { %764 = vmatpush1.bf16.msra.mxu1 %v763_v20 }
 0x144   :  { %766 = vmatprep.subr.bf16.mxu1 %v765_v24 }
 0x147   :  { %768 = vmatpush1.bf16.msra.mxu1 %v767_v28 }
 0x148   :  { %770 = vmatprep.subr.bf16.mxu1 %v769_v29 }
 0x14b   :  { %772 = vmatpush1.bf16.msra.mxu1 %v771_v32 }
 0x201   :  { %v267_v10 = vpop.f32.mrb[0].mxu1 }
 0x202   :  { %v268_v12 = vadd.f32 %v518_v9, %v267_v10  ;;  %v625_v13 = vpop.f32.mrb[1].mxu1 }
 0x204   :  { %271 = vst [vmem:[%s1168_s11] sm:$0xff] %v268_v12  ;;  %v273_v14 = vmul.f32 %v272_v11, %v268_v12 }
 0x206   :  { %659 = vmatmul.mubr.f32.vlgmr.msra.gmra.mrb[2].mxu0 %v273_v14 }
 0x2d9   :  { %v363_v34 = vpop.f32.mrb[2].mxu0 }
 0x2da   :  { %v364_v35 = vadd.f32 %v519_v33, %v363_v34  ;;  %v660_v36 = vpop.f32.mrb[3].mxu0 }
 0x2dc   :  { %785 = vtanh.f32 %v364_v35 }
 0x2e6   :  { %v786_v37 = vpop.eup %785 }
 0x2e7   :  { %477 = vmatmul.mubr.f32.vlgmr.msra.gmra.mrb[2].mxu1 %v786_v37 }
 0x3ba   :  { %v478_v45 = vpop.f32.mrb[2].mxu1 }
 0x3bb   :  { %v479_v0 = vadd.f32 %v478_v45, %v405_v43  ;;  %v480_v46 = vpop.f32.mrb[3].mxu1 }
 0x3bc   :  { %v481_v47 = vadd.f32 %v480_v46, %v409_v44 }
 0x3bd   :  { %v520_v48 = vmul.f32 -1.442695, %v479_v0 }
 0x3be   :  { %v521_v49 = vmul.f32 -1.442695, %v481_v47 }
 0x3bf   :  { %787 = vpow2.f32 %v520_v48 }
 0x3c0   :  { %789 = vpow2.f32 %v521_v49 }
 0x3c9   :  { %v788_v50 = vpop.eup %787 }
 0x3ca   :  { %v790_v51 = vpop.eup %789  ;;  %v489_v52 = vadd.f32 1.0, %v788_v50 }
 0x3cb   :  { %v490_v53 = vadd.f32 1.0, %v790_v51 }
 0x3cc   :  { %791 = vrcp.f32 %v489_v52 }
 0x3cd   :  { %793 = vrcp.f32 %v490_v53 }
 0x3d6   :  { %v792_v54 = vpop.eup %791 }
 0x3d7   :  { %v794_v55 = vpop.eup %793  ;;  %495 = vst [vmem:[#allocation7] sm:$0xff] %v792_v54 }
 0x3d8   :  { %496 = vst [vmem:[#allocation7 + $0x8] sm:$0xff] %v794_v55 }
 0x3d9   :  { %850 = shalt.err (!%p847_p6)
}
 0x3da   :  { %s851_s2 = scalar_lea.hbm %s1167_s10, 256 }
 0x3db   :  { %p852_p7 = scmp.ne.s32.totalorder %s1167_s10, %s851_s2  ;;  %p855_p8 = scmp.lt.u32.totalorder %s851_s2, %s1167_s10 }
 0x3dd   :  { %p857_p9 = pnand %p855_p8, %p852_p7 }
 0x3df   :  { %860 = shalt.err (!%p857_p9)
}
 0x3e0   :  { %506 = dma.vmem_to_hbm [thread:$0]  %s504_s25, 256, %s1167_s10, [#allocation4]  }
 0x3e1   :  { %865 = dma.done.wait [#allocation4], 256  }
 0x3e2   :  { %866 = vsyncadd [#allocation4], 4294967040 }
 0x3e3   :  { %514 = vsyncpa [#allocation3], 1 }
 0x3e4   :  { %515 = vsyncpa [#allocation6], 1 }
 0x3e5   :  { %516 = vsyncpa [#allocation4], 1 }

</bundles_post_ra>
